<compile_context>
chip_gen: v6e
topology: v6e:2x2x1
jax: 0.10.0
libtpu: 0.0.40
codegen_flags: <defaults>
</compile_context>

<pallas_src>
import jax
import jax.numpy as jnp
from jax.experimental import pallas as pl
from jax.experimental.pallas import tpu as pltpu

LANE = 128      # TPU lane width; hidden/output feature dims are padded to this.
OUT_DIM = 10    # lin5 output width in the PyTorch module.
MAX_TILE_B = 2048


def _round_up(n, m):
    return ((n + m - 1) // m) * m


# --------------------------------------------------------------------------
# Kernel: fused lin1..lin5 + ReLU on one (tile_b, F) batch tile.
# --------------------------------------------------------------------------
def mlp_kernel(x_ref, w1_ref, ws_ref, bs_ref, o_ref):
    # Layer 1: (tile_b, F_pad) @ (F_pad, 128) -> f32 accum, f32 bias/ReLU.
    h = jnp.dot(x_ref[...], w1_ref[...],
                preferred_element_type=jnp.float32) + bs_ref[0]
    h = jnp.maximum(h, 0.0)

    # Layers 2..5: stacked (4, 128, 128) weights, static index -> (128, 128) tile.
    for l in range(4):
        h = jnp.dot(h.astype(jnp.bfloat16), ws_ref[l],
                    preferred_element_type=jnp.float32) + bs_ref[l + 1]
        if l < 3:                       # no ReLU after the final (lin5) layer
            h = jnp.maximum(h, 0.0)

    o_ref[...] = h.astype(o_ref.dtype)  # lane-dense bf16 store


# --------------------------------------------------------------------------
# pallas_call wrapper (operates on pre-padded / packed arrays)
# --------------------------------------------------------------------------
def mlp_forward_padded(x_p, w1_p, w_stack, b_stack, tile_b):
    """x_p: (B_pad, F_pad) bf16 with B_pad % tile_b == 0.
    w1_p: (F_pad, 128) bf16.  w_stack: (4, 128, 128) bf16.  b_stack: (5, 1, 128) f32."""
    b_pad, f_in_pad = x_p.shape
    n_tiles = b_pad // tile_b

    flops = 2 * b_pad * (f_in_pad * LANE + 4 * LANE * LANE)
    bytes_accessed = (x_p.size * 2 + w1_p.size * 2 + w_stack.size * 2
                      + b_stack.size * 4 + b_pad * LANE * 2)

    return pl.pallas_call(
        mlp_kernel,
        out_shape=jax.ShapeDtypeStruct((b_pad, LANE), jnp.bfloat16),
        grid=(n_tiles,),
        in_specs=[
            # Activations: tiled over batch; full (unpadded-to-128) feature dim.
            pl.BlockSpec((tile_b, f_in_pad), lambda i: (i, 0)),
            # Weights/biases: constant index maps -> fetched once, VMEM-resident.
            pl.BlockSpec((f_in_pad, LANE), lambda i: (0, 0)),
            pl.BlockSpec((4, LANE, LANE), lambda i: (0, 0, 0)),
            pl.BlockSpec((5, 1, LANE), lambda i: (0, 0, 0)),
        ],
        out_specs=pl.BlockSpec((tile_b, LANE), lambda i: (i, 0)),
        compiler_params=pltpu.CompilerParams(
            dimension_semantics=("parallel",)),   # batch tiles independent -> megacore
        cost_estimate=pl.CostEstimate(
            flops=flops, transcendentals=0, bytes_accessed=bytes_accessed),
    )(x_p, w1_p, w_stack, b_stack)


# --------------------------------------------------------------------------
# Parameter construction / packing
# --------------------------------------------------------------------------
def init_params(key, in_feature):
    """Matches the PyTorch module: weights xavier_uniform_, bias U(+-1/sqrt(fan_in)).
    Weights are stored transposed as (fan_in, fan_out), biases as (1, fan_out)."""
    dims = [
        (in_feature, in_feature * 2),
        (in_feature * 2, in_feature * 2 + 10),
        (in_feature * 2 + 10, in_feature * 2 + 20),
        (in_feature * 2 + 20, in_feature * 2 + 10),
        (in_feature * 2 + 10, OUT_DIM),
    ]
    params = []
    for (fan_in, fan_out) in dims:
        key, kw, kb = jax.random.split(key, 3)
        w_bound = jnp.sqrt(6.0 / (fan_in + fan_out))          # xavier_uniform_
        w = jax.random.uniform(kw, (fan_in, fan_out), jnp.float32,
                               minval=-w_bound, maxval=w_bound)
        b_bound = 1.0 / jnp.sqrt(float(fan_in))               # torch Linear bias default
        b = jax.random.uniform(kb, (1, fan_out), jnp.float32,
                               minval=-b_bound, maxval=b_bound)
        params.extend([w, b])
    return params


def pack_params(params):
    """Zero-pad and pack params for the kernel.
    Returns (w1_p bf16 (F_pad, 128), w_stack bf16 (4, 128, 128), b_stack f32 (5, 1, 128))."""
    ws, bs = params[0::2], params[1::2]
    f_in = ws[0].shape[0]
    f_in_pad = _round_up(f_in, 8)          # sublane-friendly; last dims of w1 stay 128

    w1_p = jnp.zeros((f_in_pad, LANE), jnp.float32)
    w1_p = w1_p.at[:f_in, :ws[0].shape[1]].set(ws[0])

    w_stack = jnp.zeros((4, LANE, LANE), jnp.float32)
    for i, w in enumerate(ws[1:]):
        w_stack = w_stack.at[i, :w.shape[0], :w.shape[1]].set(w)

    b_stack = jnp.zeros((5, 1, LANE), jnp.float32)
    for i, b in enumerate(bs):
        b_stack = b_stack.at[i, :, :b.shape[1]].set(b)

    return w1_p.astype(jnp.bfloat16), w_stack.astype(jnp.bfloat16), b_stack


# --------------------------------------------------------------------------
# Batch tiling choice
# --------------------------------------------------------------------------
def _choose_batch_tiling(batch):
    """Pick (b_pad, tile_b): tiles up to 2048 rows, multiple of 8, and >= 2 tiles
    whenever the batch is big enough so both v7x TensorCores get work."""
    b8 = _round_up(max(batch, 1), 8)
    if b8 <= 16:
        return b8, b8                              # tiny batch: single tile
    tile_b = min(MAX_TILE_B, _round_up((b8 + 1) // 2, 8))
    b_pad = _round_up(b8, tile_b)
    return b_pad, tile_b


# --------------------------------------------------------------------------
# Public forward (mirrors MLPClassifer.forward)
# --------------------------------------------------------------------------
def mlp_classifier_forward(feature_matrix_batch, w1_p, w_stack, b_stack):
    # PyTorch does .squeeze(); we squeeze only non-batch singleton dims so a
    # batch of 1 still keeps the (B, F) contract.
    squeeze_axes = tuple(i for i in range(1, feature_matrix_batch.ndim)
                         if feature_matrix_batch.shape[i] == 1)
    x = jnp.squeeze(feature_matrix_batch, axis=squeeze_axes).astype(jnp.float32)
    B, F = x.shape

    f_in_pad = w1_p.shape[0]
    b_pad, tile_b = _choose_batch_tiling(B)

    if (b_pad, f_in_pad) != (B, F):
        x = jnp.zeros((b_pad, f_in_pad), jnp.float32).at[:B, :F].set(x)
    x = x.astype(jnp.bfloat16)

    out_pad = mlp_forward_padded(x, w1_p, w_stack, b_stack, tile_b)
    return out_pad[:B, :OUT_DIM].astype(jnp.float32)
    # TODO(synk): at B~8 this call is weight-DMA/launch bound; batch requests at the
    # call site (or keep weights VMEM-resident across calls) for an order-of-magnitude win.


# --------------------------------------------------------------------------
# References
# --------------------------------------------------------------------------
def _squeeze_like_module(x):
    axes = tuple(i for i in range(1, x.ndim) if x.shape[i] == 1)
    return jnp.squeeze(x, axis=axes).astype(jnp.float32)


def reference_forward_bf16(feature_matrix_batch, params):
    """Same numerics as the kernel: bf16 matmul operands, f32 accum/bias/ReLU,
    final result stored as bf16 (mirrors the kernel's bf16 output)."""
    x = _squeeze_like_module(feature_matrix_batch)
    h = x
    n_layers = len(params) // 2
    for li in range(n_layers):
        w, b = params[2 * li], params[2 * li + 1]
        h = jnp.dot(h.astype(jnp.bfloat16), w.astype(jnp.bfloat16),
                    preferred_element_type=jnp.float32) + b
        if li < n_layers - 1:
            h = jnp.maximum(h, 0.0)
    return h.astype(jnp.bfloat16).astype(jnp.float32)


def reference_forward_f32(feature_matrix_batch, params):
    x = _squeeze_like_module(feature_matrix_batch)
    w1, b1, w2, b2, w3, b3, w4, b4, w5, b5 = params
    h = jnp.maximum(x @ w1 + b1, 0.0)
    h = jnp.maximum(h @ w2 + b2, 0.0)
    h = jnp.maximum(h @ w3 + b3, 0.0)
    h = jnp.maximum(h @ w4 + b4, 0.0)
    return h @ w5 + b5


# --------------------------------------------------------------------------
if __name__ == "__main__":
    key = jax.random.PRNGKey(0)
    k_params, k_x = jax.random.split(key)

    in_feature = 32
    batch = 8
    params = init_params(k_params, in_feature)
    w1_p, w_stack, b_stack = pack_params(params)

    # Input mimics the PyTorch call: (B, 1, F); the wrapper squeezes the middle dim.
    x = jax.random.normal(k_x, (batch, 1, in_feature), dtype=jnp.float32)

    fwd = jax.jit(mlp_classifier_forward)
    out = jax.block_until_ready(fwd(x, w1_p, w_stack, b_stack))

    assert out.shape == (batch, OUT_DIM), out.shape

    # bf16-matched reference is the real correctness gate; f32 reference is a
    # looser semantic sanity check.
    ref_bf16 = reference_forward_bf16(x, params)
    ref_f32 = reference_forward_f32(x, params)

    assert jnp.allclose(out, ref_bf16, atol=2e-3, rtol=2e-3), "mismatch vs bf16 reference"
    assert jnp.allclose(out, ref_f32, atol=5e-2, rtol=5e-2), "mismatch vs f32 reference"

    print("KERNEL_OK")
</pallas_src>

<mosaic_0001>
module attributes {stable_mosaic.version = 11 : i64} {
  func.func @mlp_kernel(%arg0: i32, %arg1: memref<8x32xbf16, #tpu.memory_space<vmem>>, %arg2: memref<32x128xbf16, #tpu.memory_space<vmem>>, %arg3: memref<4x128x128xbf16, #tpu.memory_space<vmem>>, %arg4: memref<5x1x128xf32, #tpu.memory_space<vmem>>, %arg5: memref<8x128xbf16, #tpu.memory_space<vmem>>) attributes {dimension_semantics = [#tpu.dimension_semantics<parallel>], iteration_bounds = array<i64: 1>, scalar_prefetch = 0 : i64, scratch_operands = 0 : i64, tpu.core_type = #tpu.core_type<tc>, window_params = [{transform_indices = @transform_0, window_bounds = array<i64: 8, 32>}, {pipeline_mode = #tpu.pipeline_mode<synchronous>, transform_indices = @transform_1, window_bounds = array<i64: 32, 128>}, {pipeline_mode = #tpu.pipeline_mode<synchronous>, transform_indices = @transform_2, window_bounds = array<i64: 4, 128, 128>}, {pipeline_mode = #tpu.pipeline_mode<synchronous>, transform_indices = @transform_3, window_bounds = array<i64: 5, 1, 128>}, {transform_indices = @transform_4, window_bounds = array<i64: 8, 128>}]} {
    %c0 = arith.constant 0 : index
    %c0_0 = arith.constant 0 : index
    %0 = vector.load %arg1[%c0, %c0_0] : memref<8x32xbf16, #tpu.memory_space<vmem>>, vector<8x32xbf16>
    %c0_1 = arith.constant 0 : index
    %c0_2 = arith.constant 0 : index
    %1 = vector.load %arg2[%c0_1, %c0_2] : memref<32x128xbf16, #tpu.memory_space<vmem>>, vector<32x128xbf16>
    %cst = arith.constant dense<0.000000e+00> : vector<8x128xf32>
    %2 = tpu.matmul %0, %1, %cst {dimension_numbers = #tpu.dot_dimension_numbers<[1], [0], [0], [1], [0, 0, 1, 1], [], []>} : vector<8x32xbf16>, vector<32x128xbf16>, vector<8x128xf32> -> vector<8x128xf32>
    %c0_3 = arith.constant 0 : index
    %c0_4 = arith.constant 0 : index
    %c0_5 = arith.constant 0 : index
    %3 = vector.load %arg4[%c0_3, %c0_4, %c0_5] : memref<5x1x128xf32, #tpu.memory_space<vmem>>, vector<1x1x128xf32>
    %4 = vector.shape_cast %3 : vector<1x1x128xf32> to vector<1x128xf32>
    %5 = vector.broadcast %4 : vector<1x128xf32> to vector<8x128xf32>
    %6 = arith.addf %2, %5 : vector<8x128xf32>
    %cst_6 = arith.constant 0.000000e+00 : f32
    %7 = vector.broadcast %cst_6 : f32 to vector<8x128xf32>
    %8 = arith.maximumf %6, %7 : vector<8x128xf32>
    %9 = arith.truncf %8 : vector<8x128xf32> to vector<8x128xbf16>
    %c0_7 = arith.constant 0 : index
    %c0_8 = arith.constant 0 : index
    %c0_9 = arith.constant 0 : index
    %10 = vector.load %arg3[%c0_7, %c0_8, %c0_9] : memref<4x128x128xbf16, #tpu.memory_space<vmem>>, vector<1x128x128xbf16>
    %11 = vector.shape_cast %10 : vector<1x128x128xbf16> to vector<128x128xbf16>
    %cst_10 = arith.constant dense<0.000000e+00> : vector<8x128xf32>
    %12 = tpu.matmul %9, %11, %cst_10 {dimension_numbers = #tpu.dot_dimension_numbers<[1], [0], [0], [1], [0, 0, 1, 1], [], []>} : vector<8x128xbf16>, vector<128x128xbf16>, vector<8x128xf32> -> vector<8x128xf32>
    %c1 = arith.constant 1 : index
    %c0_11 = arith.constant 0 : index
    %c0_12 = arith.constant 0 : index
    %13 = vector.load %arg4[%c1, %c0_11, %c0_12] : memref<5x1x128xf32, #tpu.memory_space<vmem>>, vector<1x1x128xf32>
    %14 = vector.shape_cast %13 : vector<1x1x128xf32> to vector<1x128xf32>
    %15 = vector.broadcast %14 : vector<1x128xf32> to vector<8x128xf32>
    %16 = arith.addf %12, %15 : vector<8x128xf32>
    %cst_13 = arith.constant 0.000000e+00 : f32
    %17 = vector.broadcast %cst_13 : f32 to vector<8x128xf32>
    %18 = arith.maximumf %16, %17 : vector<8x128xf32>
    %19 = arith.truncf %18 : vector<8x128xf32> to vector<8x128xbf16>
    %c1_14 = arith.constant 1 : index
    %c0_15 = arith.constant 0 : index
    %c0_16 = arith.constant 0 : index
    %20 = vector.load %arg3[%c1_14, %c0_15, %c0_16] : memref<4x128x128xbf16, #tpu.memory_space<vmem>>, vector<1x128x128xbf16>
    %21 = vector.shape_cast %20 : vector<1x128x128xbf16> to vector<128x128xbf16>
    %cst_17 = arith.constant dense<0.000000e+00> : vector<8x128xf32>
    %22 = tpu.matmul %19, %21, %cst_17 {dimension_numbers = #tpu.dot_dimension_numbers<[1], [0], [0], [1], [0, 0, 1, 1], [], []>} : vector<8x128xbf16>, vector<128x128xbf16>, vector<8x128xf32> -> vector<8x128xf32>
    %c2 = arith.constant 2 : index
    %c0_18 = arith.constant 0 : index
    %c0_19 = arith.constant 0 : index
    %23 = vector.load %arg4[%c2, %c0_18, %c0_19] : memref<5x1x128xf32, #tpu.memory_space<vmem>>, vector<1x1x128xf32>
    %24 = vector.shape_cast %23 : vector<1x1x128xf32> to vector<1x128xf32>
    %25 = vector.broadcast %24 : vector<1x128xf32> to vector<8x128xf32>
    %26 = arith.addf %22, %25 : vector<8x128xf32>
    %cst_20 = arith.constant 0.000000e+00 : f32
    %27 = vector.broadcast %cst_20 : f32 to vector<8x128xf32>
    %28 = arith.maximumf %26, %27 : vector<8x128xf32>
    %29 = arith.truncf %28 : vector<8x128xf32> to vector<8x128xbf16>
    %c2_21 = arith.constant 2 : index
    %c0_22 = arith.constant 0 : index
    %c0_23 = arith.constant 0 : index
    %30 = vector.load %arg3[%c2_21, %c0_22, %c0_23] : memref<4x128x128xbf16, #tpu.memory_space<vmem>>, vector<1x128x128xbf16>
    %31 = vector.shape_cast %30 : vector<1x128x128xbf16> to vector<128x128xbf16>
    %cst_24 = arith.constant dense<0.000000e+00> : vector<8x128xf32>
    %32 = tpu.matmul %29, %31, %cst_24 {dimension_numbers = #tpu.dot_dimension_numbers<[1], [0], [0], [1], [0, 0, 1, 1], [], []>} : vector<8x128xbf16>, vector<128x128xbf16>, vector<8x128xf32> -> vector<8x128xf32>
    %c3 = arith.constant 3 : index
    %c0_25 = arith.constant 0 : index
    %c0_26 = arith.constant 0 : index
    %33 = vector.load %arg4[%c3, %c0_25, %c0_26] : memref<5x1x128xf32, #tpu.memory_space<vmem>>, vector<1x1x128xf32>
    %34 = vector.shape_cast %33 : vector<1x1x128xf32> to vector<1x128xf32>
    %35 = vector.broadcast %34 : vector<1x128xf32> to vector<8x128xf32>
    %36 = arith.addf %32, %35 : vector<8x128xf32>
    %cst_27 = arith.constant 0.000000e+00 : f32
    %37 = vector.broadcast %cst_27 : f32 to vector<8x128xf32>
    %38 = arith.maximumf %36, %37 : vector<8x128xf32>
    %39 = arith.truncf %38 : vector<8x128xf32> to vector<8x128xbf16>
    %c3_28 = arith.constant 3 : index
    %c0_29 = arith.constant 0 : index
    %c0_30 = arith.constant 0 : index
    %40 = vector.load %arg3[%c3_28, %c0_29, %c0_30] : memref<4x128x128xbf16, #tpu.memory_space<vmem>>, vector<1x128x128xbf16>
    %41 = vector.shape_cast %40 : vector<1x128x128xbf16> to vector<128x128xbf16>
    %cst_31 = arith.constant dense<0.000000e+00> : vector<8x128xf32>
    %42 = tpu.matmul %39, %41, %cst_31 {dimension_numbers = #tpu.dot_dimension_numbers<[1], [0], [0], [1], [0, 0, 1, 1], [], []>} : vector<8x128xbf16>, vector<128x128xbf16>, vector<8x128xf32> -> vector<8x128xf32>
    %c4 = arith.constant 4 : index
    %c0_32 = arith.constant 0 : index
    %c0_33 = arith.constant 0 : index
    %43 = vector.load %arg4[%c4, %c0_32, %c0_33] : memref<5x1x128xf32, #tpu.memory_space<vmem>>, vector<1x1x128xf32>
    %44 = vector.shape_cast %43 : vector<1x1x128xf32> to vector<1x128xf32>
    %45 = vector.broadcast %44 : vector<1x128xf32> to vector<8x128xf32>
    %46 = arith.addf %42, %45 : vector<8x128xf32>
    %47 = arith.truncf %46 : vector<8x128xf32> to vector<8x128xbf16>
    %c0_34 = arith.constant 0 : index
    %c0_35 = arith.constant 0 : index
    %48 = vector.load %arg5[%c0_34, %c0_35] : memref<8x128xbf16, #tpu.memory_space<vmem>>, vector<8x128xbf16>
    tpu.vector_store %arg5[%c0_34, %c0_35], %47 {strides = array<i32>} : memref<8x128xbf16, #tpu.memory_space<vmem>>, vector<8x128xbf16>,
    return
  }
  func.func @transform_0(%arg0: i32) -> (i32, i32) {
    %c0_i32 = arith.constant 0 : i32
    %c0_i32_0 = arith.constant 0 : i32
    return %arg0, %c0_i32 : i32, i32
  }
  func.func @transform_1(%arg0: i32) -> (i32, i32) {
    %c0_i32 = arith.constant 0 : i32
    %c0_i32_0 = arith.constant 0 : i32
    %c0_i32_1 = arith.constant 0 : i32
    return %c0_i32, %c0_i32_0 : i32, i32
  }
  func.func @transform_2(%arg0: i32) -> (i32, i32, i32) {
    %c0_i32 = arith.constant 0 : i32
    %c0_i32_0 = arith.constant 0 : i32
    %c0_i32_1 = arith.constant 0 : i32
    %c0_i32_2 = arith.constant 0 : i32
    return %c0_i32, %c0_i32_0, %c0_i32_1 : i32, i32, i32
  }
  func.func @transform_3(%arg0: i32) -> (i32, i32, i32) {
    %c0_i32 = arith.constant 0 : i32
    %c0_i32_0 = arith.constant 0 : i32
    %c0_i32_1 = arith.constant 0 : i32
    %c0_i32_2 = arith.constant 0 : i32
    return %c0_i32, %c0_i32_0, %c0_i32_1 : i32, i32, i32
  }
  func.func @transform_4(%arg0: i32) -> (i32, i32) {
    %c0_i32 = arith.constant 0 : i32
    %c0_i32_0 = arith.constant 0 : i32
    return %arg0, %c0_i32 : i32, i32
  }
}

</mosaic_0001>

<bundles_post_ra>
// kernel: mlp_classifier_forward.1
= control target key start
LH: loop header
LB: loop body
LE: loop exit
PB: predicated region body
PF: predicated region fallthrough
CT: control target
= control target key end

     0   :  { %9 = vsyncpa [#allocation3], 0  ;;  %s938_s0 = inlined_call_operand.vmem [shape: bf16[8,32], index: 0, kind: input, shape index: {}]   ;;  %s939_s1 = inlined_call_operand.hbm [shape: bf16[32,128], index: 1, kind: input, shape index: {}]   ;;  %s940_s2 = inlined_call_operand.hbm [shape: bf16[4,128,128], index: 2, kind: input, shape index: {}]   ;;  %s941_s3 = inlined_call_operand.vmem [shape: f32[5,1,128], index: 3, kind: input, shape index: {}]   ;;  %s942_s4 = inlined_call_operand.vmem [shape: bf16[8,128], index: 4, kind: output, shape index: {}]  }
   0x1   :  { %10 = vsyncpa [#allocation5], 0  ;;  %s836_s15 = smov [#allocation2]  }
   0x2   :  { %s18_s16 = sshll.u32 %s836_s15, 4  ;;  %s19_s16 = int_to_ptr.vmem [resolvable:$true] %s18_s16 }
   0x3   :  { %s800_s17 = scalar_lea.vmem %s19_s16, 256  ;;  %p805_p1 = scmp.lt.s32.totalorder %s19_s16, %s19_s16 }
   0x4   :  { %p801_p0 = scmp.ne.s32.totalorder %s19_s16, %s800_s17  ;;  %p806_p2 = scmp.lt.s32.totalorder %s800_s17, %s800_s17 }
   0x6   :  { %p807_p3 = por %p806_p2, %p805_p1 }
   0x8   :  { %p808_p4 = pnand %p807_p3, %p801_p0 }
   0xa   :  { %811 = shalt.err (!%p808_p4)
}
   0xb   :  { %s837_s18 = smov 64   ;;  %s838_s19 = smov 4  }
   0xc   :  { %24 = dma.hbm_to_vmem [thread:$0]  %s939_s1, 256, %s19_s16, [#allocation3], %s837_s18, %s837_s18, %s838_s19  }
   0xd   :  { %s839_s22 = smov [#allocation4]  }
   0xe   :  { %s30_s23 = sshll.u32 %s839_s22, 4  ;;  %s31_s23 = int_to_ptr.vmem [resolvable:$true] %s30_s23 }
   0xf   :  { %s820_s24 = scalar_lea.vmem %s31_s23, 4096  ;;  %p825_p6 = scmp.lt.s32.totalorder %s31_s23, %s31_s23 }
  0x10   :  { %p821_p5 = scmp.ne.s32.totalorder %s31_s23, %s820_s24  ;;  %p826_p7 = scmp.lt.s32.totalorder %s820_s24, %s820_s24 }
  0x12   :  { %p827_p8 = por %p826_p7, %p825_p6 }
  0x14   :  { %p828_p9 = pnand %p827_p8, %p821_p5 }
  0x16   :  { %831 = shalt.err (!%p828_p9)
}
  0x17   :  { %36 = dma.hbm_to_vmem [thread:$0]  %s940_s2, 4096, %s31_s23, [#allocation5], %s837_s18, %s837_s18, %s838_s19  }
  0x18   :  { %832 = dma.done.wait [#allocation3], 256  }
  0x19   :  { %833 = vsyncadd [#allocation3], 4294967040 }
  0x1a   :  { %834 = dma.done.wait [#allocation5], 4096  }
  0x1b   :  { %835 = vsyncadd [#allocation5], 4294963200  ;;  %v840_v0 = vmov 0.0   ;;  %vm841_vm0 = vmmov 0   ;;  %v758_v1 = vld [vmem:[#allocation2 + $0x8] sm:$0xff]   ;;  %v759_v2 = vld [vmem:[#allocation2] sm:$0xff]  }
  0x1c   :  { %664 = vmatprep.subr.bf16.mxu0 %v840_v0  ;;  %668 = vmatprep.mubr.msk.bf16.mxu0 %vm841_vm0, %v840_v0  ;;  %v760_v3 = vld [vmem:[#allocation4 + $0x38] sm:$0xff]   ;;  %vm70_vm1 = vcmask 261120   ;;  %v761_v4 = vld [vmem:[#allocation4 + $0x30] sm:$0xff]   ;;  %v762_v6 = vld [vmem:[#allocation4 + $0x28] sm:$0xff]  }
  0x1d   :  { %672 = vmatprep.subr.bf16.mxu1 %v840_v0  ;;  %688 = vmatprep.mubr.msk.bf16.mxu1 %vm841_vm0, %v840_v0  ;;  %v46_v5 = vld [vmem:[%s938_s0] sm:$0xf]  ;;  %v763_v7 = vld [vmem:[#allocation4 + $0x20] sm:$0xff]   ;;  %v764_v8 = vld [vmem:[#allocation4 + $0x18] sm:$0xff]  }
  0x1e   :  { %665 = vmatpush3.bf16.msra.mxu0 %v758_v1  ;;  %673 = vmatpush3.bf16.msra.mxu1 %v760_v3  ;;  %v765_v9 = vld [vmem:[#allocation4 + $0x10] sm:$0xff]   ;;  %v766_v10 = vld [vmem:[#allocation4 + $0x8] sm:$0xff]   ;;  %v767_v11 = vld [vmem:[#allocation4] sm:$0xff]  }
  0x1f   :  { %666 = vmatprep.subr.bf16.mxu0 %v840_v0  ;;  %674 = vmatprep.subr.bf16.mxu1 %v840_v0  ;;  %v768_v12 = vld [vmem:[#allocation4 + $0x78] sm:$0xff]   ;;  %v769_v13 = vld [vmem:[#allocation4 + $0x70] sm:$0xff]   ;;  %v770_v14 = vld [vmem:[#allocation4 + $0x68] sm:$0xff]  }
  0x20   :  { %v771_v15 = vld [vmem:[#allocation4 + $0x60] sm:$0xff]   ;;  %v772_v16 = vld [vmem:[#allocation4 + $0x58] sm:$0xff]   ;;  %v773_v17 = vld [vmem:[#allocation4 + $0x50] sm:$0xff]  }
  0x21   :  { %v581_v18 = vld [vmem:[%s941_s3] ss:$0 sm:$0xff]  ;;  %v774_v26 = vld [vmem:[#allocation4 + $0x48] sm:$0xff]   ;;  %v775_v27 = vld [vmem:[#allocation4 + $0x40] sm:$0xff]  }
  0x22   :  { %667 = vmatpush3.bf16.msra.mxu0 %v759_v2  ;;  %675 = vmatpush3.bf16.msra.mxu1 %v761_v4  ;;  %v776_v28 = vld [vmem:[#allocation4 + $0xb8] sm:$0xff]   ;;  %v777_v29 = vld [vmem:[#allocation4 + $0xb0] sm:$0xff]   ;;  %v778_v30 = vld [vmem:[#allocation4 + $0xa8] sm:$0xff]  }
  0x23   :  { %692 = vmatprep.subr.bf16.mxu0 %v840_v0  ;;  %676 = vmatprep.subr.bf16.mxu1 %v840_v0  ;;  %v779_v31 = vld [vmem:[#allocation4 + $0xa0] sm:$0xff]   ;;  %v780_v32 = vld [vmem:[#allocation4 + $0x98] sm:$0xff]   ;;  %v781_v33 = vld [vmem:[#allocation4 + $0x90] sm:$0xff]  }
  0x24   :  { %v586_v34 = vld [vmem:[%s941_s3 + $0x1] ss:$0 sm:$0xff]  ;;  %v782_v42 = vld [vmem:[#allocation4 + $0x88] sm:$0xff]   ;;  %v783_v43 = vld [vmem:[#allocation4 + $0x80] sm:$0xff]  }
  0x25   :  { %669 = vmatmul.mubr.msk.bf16.vlgmr.msra.gmra.mxu0 %vm70_vm1, %v46_v5  ;;  %v784_v44 = vld [vmem:[#allocation4 + $0xf8] sm:$0xff]   ;;  %v785_v45 = vld [vmem:[#allocation4 + $0xf0] sm:$0xff]   ;;  %v786_v46 = vld [vmem:[#allocation4 + $0xe8] sm:$0xff]  }
  0x26   :  { %708 = vmatprep.mubr.msk.bf16.mxu0 %vm841_vm0, %v840_v0  ;;  %677 = vmatpush3.bf16.msra.mxu1 %v762_v6  ;;  %v787_v47 = vld [vmem:[#allocation4 + $0xe0] sm:$0xff]   ;;  %v788_v48 = vld [vmem:[#allocation4 + $0xd8] sm:$0xff]   ;;  %v789_v49 = vld [vmem:[#allocation4 + $0xd0] sm:$0xff]  }
  0x27   :  { %678 = vmatprep.subr.bf16.mxu1 %v840_v0  ;;  %693 = vmatpush3.bf16.msra.mxu0 %v768_v12  ;;  %v596_v50 = vld [vmem:[%s941_s3 + $0x2] ss:$0 sm:$0xff]  ;;  %v790_v58 = vld [vmem:[#allocation4 + $0xc8] sm:$0xff]   ;;  %v791_v59 = vld [vmem:[#allocation4 + $0xc0] sm:$0xff]  }
  0x28   :  { %694 = vmatprep.subr.bf16.mxu0 %v840_v0  ;;  %v606_v60 = vld [vmem:[%s941_s3 + $0x3] ss:$0 sm:$0xff]  ;;  %v616_v5 = vld [vmem:[%s941_s3 + $0x4] ss:$0 sm:$0xff] }
  0x2a   :  { %679 = vmatpush3.bf16.msra.mxu1 %v763_v7 }
  0x2b   :  { %680 = vmatprep.subr.bf16.mxu1 %v840_v0  ;;  %695 = vmatpush3.bf16.msra.mxu0 %v769_v13 }
  0x2c   :  { %696 = vmatprep.subr.bf16.mxu0 %v840_v0 }
  0x2e   :  { %681 = vmatpush3.bf16.msra.mxu1 %v764_v8 }
  0x2f   :  { %682 = vmatprep.subr.bf16.mxu1 %v840_v0  ;;  %697 = vmatpush3.bf16.msra.mxu0 %v770_v14 }
  0x30   :  { %698 = vmatprep.subr.bf16.mxu0 %v840_v0 }
  0x32   :  { %683 = vmatpush3.bf16.msra.mxu1 %v765_v9 }
  0x33   :  { %684 = vmatprep.subr.bf16.mxu1 %v840_v0  ;;  %699 = vmatpush3.bf16.msra.mxu0 %v771_v15 }
  0x34   :  { %700 = vmatprep.subr.bf16.mxu0 %v840_v0 }
  0x36   :  { %685 = vmatpush3.bf16.msra.mxu1 %v766_v10 }
  0x37   :  { %686 = vmatprep.subr.bf16.mxu1 %v840_v0  ;;  %701 = vmatpush3.bf16.msra.mxu0 %v772_v16 }
  0x38   :  { %702 = vmatprep.subr.bf16.mxu0 %v840_v0 }
  0x3a   :  { %687 = vmatpush3.bf16.msra.mxu1 %v767_v11 }
  0x3b   :  { %712 = vmatprep.subr.bf16.mxu1 %v840_v0  ;;  %703 = vmatpush3.bf16.msra.mxu0 %v773_v17 }
  0x3c   :  { %704 = vmatprep.subr.bf16.mxu0 %v840_v0 }
  0x3f   :  { %705 = vmatpush3.bf16.msra.mxu0 %v774_v26 }
  0x40   :  { %706 = vmatprep.subr.bf16.mxu0 %v840_v0 }
  0x43   :  { %707 = vmatpush3.bf16.msra.mxu0 %v775_v27 }
  0x44   :  { %732 = vmatprep.subr.bf16.mxu0 %v840_v0 }
  0xe5   :  { %v108_v19 = vpop.f32.mrf.mxu0 }
  0xe6   :  { %v109_v20 = vadd.f32 %v581_v18, %v108_v19 }
  0xe7   :  { %v670_v21 = vpop.f32.mrf.mxu0 }
  0xe8   :  { %v114_v22 = vmax.f32 %v109_v20, 0.0 }
  0xe9   :  { %v111_v23 = vpop.f32.mrf.mxu0 }
  0xea   :  { %v115_v24 = vpack.c.bf16 %v114_v22, %v114_v22 }
  0xeb   :  { %v671_v25 = vpop.f32.mrf.mxu0 }
  0xec   :  { %689 = vmatmul.mubr.bf16.vlgmr.msra.gmra.mxu1 %v115_v24 }
  0xed   :  { %728 = vmatprep.mubr.msk.bf16.mxu1 %vm841_vm0, %v840_v0  ;;  %713 = vmatpush3.bf16.msra.mxu1 %v776_v28 }
  0xee   :  { %714 = vmatprep.subr.bf16.mxu1 %v840_v0 }
  0xf1   :  { %715 = vmatpush3.bf16.msra.mxu1 %v777_v29 }
  0xf2   :  { %716 = vmatprep.subr.bf16.mxu1 %v840_v0 }
  0xf5   :  { %717 = vmatpush3.bf16.msra.mxu1 %v778_v30 }
  0xf6   :  { %718 = vmatprep.subr.bf16.mxu1 %v840_v0 }
  0xf9   :  { %719 = vmatpush3.bf16.msra.mxu1 %v779_v31 }
  0xfa   :  { %720 = vmatprep.subr.bf16.mxu1 %v840_v0 }
  0xfd   :  { %721 = vmatpush3.bf16.msra.mxu1 %v780_v32 }
  0xfe   :  { %722 = vmatprep.subr.bf16.mxu1 %v840_v0 }
 0x101   :  { %723 = vmatpush3.bf16.msra.mxu1 %v781_v33 }
 0x102   :  { %724 = vmatprep.subr.bf16.mxu1 %v840_v0 }
 0x105   :  { %725 = vmatpush3.bf16.msra.mxu1 %v782_v42 }
 0x106   :  { %726 = vmatprep.subr.bf16.mxu1 %v840_v0 }
 0x109   :  { %727 = vmatpush3.bf16.msra.mxu1 %v783_v43 }
 0x1ac   :  { %v222_v35 = vpop.f32.mrf.mxu1 }
 0x1ad   :  { %v223_v36 = vadd.f32 %v586_v34, %v222_v35 }
 0x1ae   :  { %v690_v37 = vpop.f32.mrf.mxu1 }
 0x1af   :  { %v228_v38 = vmax.f32 %v223_v36, 0.0 }
 0x1b0   :  { %v225_v39 = vpop.f32.mrf.mxu1 }
 0x1b1   :  { %v229_v40 = vpack.c.bf16 %v228_v38, %v228_v38 }
 0x1b2   :  { %v691_v41 = vpop.f32.mrf.mxu1 }
 0x1b3   :  { %709 = vmatmul.mubr.bf16.vlgmr.msra.gmra.mxu0 %v229_v40 }
 0x1b4   :  { %748 = vmatprep.mubr.msk.bf16.mxu0 %vm841_vm0, %v840_v0  ;;  %733 = vmatpush3.bf16.msra.mxu0 %v784_v44 }
 0x1b5   :  { %734 = vmatprep.subr.bf16.mxu0 %v840_v0 }
 0x1b8   :  { %735 = vmatpush3.bf16.msra.mxu0 %v785_v45 }
 0x1b9   :  { %736 = vmatprep.subr.bf16.mxu0 %v840_v0 }
 0x1bc   :  { %737 = vmatpush3.bf16.msra.mxu0 %v786_v46 }
 0x1bd   :  { %738 = vmatprep.subr.bf16.mxu0 %v840_v0 }
 0x1c0   :  { %739 = vmatpush3.bf16.msra.mxu0 %v787_v47 }
 0x1c1   :  { %740 = vmatprep.subr.bf16.mxu0 %v840_v0 }
 0x1c4   :  { %741 = vmatpush3.bf16.msra.mxu0 %v788_v48 }
 0x1c5   :  { %742 = vmatprep.subr.bf16.mxu0 %v840_v0 }
 0x1c8   :  { %743 = vmatpush3.bf16.msra.mxu0 %v789_v49 }
 0x1c9   :  { %744 = vmatprep.subr.bf16.mxu0 %v840_v0 }
 0x1cc   :  { %745 = vmatpush3.bf16.msra.mxu0 %v790_v58 }
 0x1cd   :  { %746 = vmatprep.subr.bf16.mxu0 %v840_v0 }
 0x1d0   :  { %747 = vmatpush3.bf16.msra.mxu0 %v791_v59 }
 0x273   :  { %v337_v51 = vpop.f32.mrf.mxu0 }
 0x274   :  { %v338_v52 = vadd.f32 %v596_v50, %v337_v51 }
 0x275   :  { %v710_v53 = vpop.f32.mrf.mxu0 }
 0x276   :  { %v343_v54 = vmax.f32 %v338_v52, 0.0 }
 0x277   :  { %v340_v55 = vpop.f32.mrf.mxu0 }
 0x278   :  { %v344_v56 = vpack.c.bf16 %v343_v54, %v343_v54 }
 0x279   :  { %v711_v57 = vpop.f32.mrf.mxu0 }
 0x27a   :  { %729 = vmatmul.mubr.bf16.vlgmr.msra.gmra.mxu1 %v344_v56 }
 0x33a   :  { %v452_v61 = vpop.f32.mrf.mxu1 }
 0x33b   :  { %v453_v62 = vadd.f32 %v606_v60, %v452_v61 }
 0x33c   :  { %v730_v63 = vpop.f32.mrf.mxu1 }
 0x33d   :  { %v458_v1 = vmax.f32 %v453_v62, 0.0 }
 0x33e   :  { %v455_v2 = vpop.f32.mrf.mxu1 }
 0x33f   :  { %v459_v3 = vpack.c.bf16 %v458_v1, %v458_v1 }
 0x340   :  { %v731_v4 = vpop.f32.mrf.mxu1 }
 0x341   :  { %749 = vmatmul.mubr.bf16.vlgmr.msra.gmra.mxu0 %v459_v3 }
 0x401   :  { %v567_v6 = vpop.f32.mrf.mxu0 }
 0x402   :  { %v568_v0 = vadd.f32 %v616_v5, %v567_v6 }
 0x403   :  { %v750_v7 = vpop.f32.mrf.mxu0 }
 0x404   :  { %v573_v8 = vpack.c.bf16 %v568_v0, %v568_v0 }
 0x405   :  { %v570_v9 = vpop.f32.mrf.mxu0 }
 0x406   :  { %574 = vst [vmem:[%s942_s4] sm:$0xf] %v573_v8 }
 0x407   :  { %v751_v10 = vpop.f32.mrf.mxu0 }
 0x408   :  { %579 = vsyncpa [#allocation3], 1 }
 0x409   :  { %580 = vsyncpa [#allocation5], 1 }

</bundles_post_ra>
